<compile_context>
chip_gen: v7x
topology: tpu7x:2x2x1
jax: 0.10.0
libtpu: 0.0.40
codegen_flags: <defaults>
</compile_context>

<pallas_src>
import functools

import jax
import jax.numpy as jnp
from jax.experimental import pallas as pl
from jax.experimental.pallas import tpu as pltpu


def autopad(k, p=None):
    if p is None:
        p = k // 2 if isinstance(k, int) else [x // 2 for x in k]
    return p


# ----------------------------------------------------------------------------
# Pallas kernels
# ----------------------------------------------------------------------------
def _pw_kernel(x_ref, w_ref, s_ref, b_ref, o_ref, *, act):
    """Fused 1x1-conv tile: bf16 matmul (f32 acc) -> folded-BN affine -> Hardswish."""
    y = jnp.dot(x_ref[...], w_ref[...], preferred_element_type=jnp.float32)
    y = y * s_ref[...] + b_ref[...]                       # folded BatchNorm
    if act:
        y = y * jnp.clip(y + 3.0, 0.0, 6.0) * (1.0 / 6.0)  # Hardswish
    o_ref[...] = y.astype(o_ref.dtype)


def _tap_kernel(x_ref, w_ref, s_ref, b_ref, o_ref, *, taps, act):
    """Fused kxk stride-1 conv for one image: k*k row-shifted matmuls, no im2col.

    x_ref: (1, L, Cin)    flattened padded image (+ kw-1 trailing zero rows)
    w_ref: (T, Cin, Cout) per-tap 1x1 weights
    o_ref: (1, Q, Cout)   Q = Ho * Wp rows (junk columns sliced off by caller)
    """
    q, cout = o_ref.shape[1], o_ref.shape[2]
    acc = jnp.zeros((q, cout), jnp.float32)
    for t, d in enumerate(taps):                          # static unroll, T = kh*kw
        xt = x_ref[0, pl.ds(d, q), :]                     # row-shifted (Q, Cin) window
        acc = acc + jnp.dot(xt, w_ref[t], preferred_element_type=jnp.float32)
    y = acc * s_ref[...] + b_ref[...]
    if act:
        y = y * jnp.clip(y + 3.0, 0.0, 6.0) * (1.0 / 6.0)
    o_ref[0] = y.astype(o_ref.dtype)


def _taps_strided_kernel(x_ref, w_ref, s_ref, b_ref, o_ref, *, act):
    """Fused strided kxk conv row tile: per-tap bf16 matmuls accumulated in f32.

    x_ref: (T, tm, Cin)   tap-stacked strided patch rows
    w_ref: (T, Cin, Cout) per-tap 1x1 weights
    o_ref: (tm, Cout)
    """
    t = x_ref.shape[0]
    tm, cout = o_ref.shape
    acc = jnp.zeros((tm, cout), jnp.float32)
    for i in range(t):                                    # static unroll, T = kh*kw
        acc = acc + jnp.dot(x_ref[i], w_ref[i], preferred_element_type=jnp.float32)
    y = acc * s_ref[...] + b_ref[...]
    if act:
        y = y * jnp.clip(y + 3.0, 0.0, 6.0) * (1.0 / 6.0)
    o_ref[...] = y.astype(o_ref.dtype)


# ----------------------------------------------------------------------------
# Wrappers
# ----------------------------------------------------------------------------
def _vmem_limit(need_bytes):
    return int(min(max(4 * need_bytes, 16 * 2**20), 48 * 2**20))


def _pick_tm(m, need_fn, budget=24 * 2**20, start=512):
    """Row tile: keep >= 2 grid steps (megacore / v7x 2-TC) and bounded VMEM."""
    tm = start
    while tm > 8 and pl.cdiv(m, tm) < 2:
        tm //= 2
    while tm > 8 and need_fn(tm) > budget:
        tm //= 2
    return tm, need_fn(tm)


def _conv1x1(x2d, w, scale, bias, act, out_dtype):
    m, cin = x2d.shape
    cout = w.shape[1]
    out_bytes = jnp.dtype(out_dtype).itemsize

    def need(t):   # double-buffered x/out tiles + resident weight & affine
        return 2 * (t * cin * 2 + t * cout * out_bytes) + cin * cout * 2 + 4 * cout * 8

    tm, nb = _pick_tm(m, need)
    mp = pl.cdiv(m, tm) * tm
    if mp != m:
        x2d = jnp.pad(x2d, ((0, mp - m), (0, 0)))         # ragged last tile -> zero pad

    out = pl.pallas_call(
        functools.partial(_pw_kernel, act=act),
        out_shape=jax.ShapeDtypeStruct((mp, cout), out_dtype),
        grid=(mp // tm,),
        in_specs=[
            pl.BlockSpec((tm, cin), lambda i: (i, 0)),
            pl.BlockSpec((cin, cout), lambda i: (0, 0)),
            pl.BlockSpec((1, cout), lambda i: (0, 0)),
            pl.BlockSpec((1, cout), lambda i: (0, 0)),
        ],
        out_specs=pl.BlockSpec((tm, cout), lambda i: (i, 0)),
        compiler_params=pltpu.CompilerParams(
            dimension_semantics=("parallel",),
            vmem_limit_bytes=_vmem_limit(nb)),
    )(x2d, w, scale, bias)
    return out[:m]


def _conv_kxk_s1(xp_nhwc, w_taps, scale, bias, act, out_dtype, ho, wo, kh, kw):
    n, hp, wp, cin = xp_nhwc.shape
    t, _, cout = w_taps.shape
    q = ho * wp                          # one full padded-width row per output row
    l = hp * wp + (kw - 1)               # rows needed for the largest tap shift
    out_bytes = jnp.dtype(out_dtype).itemsize

    xf = xp_nhwc.reshape(n, hp * wp, cin)
    if l > hp * wp:
        xf = jnp.pad(xf, ((0, 0), (0, l - hp * wp), (0, 0)))
    taps = tuple(ky * wp + kx for ky in range(kh) for kx in range(kw))

    need = 2 * (l * cin * 2 + q * cout * out_bytes) + t * cin * cout * 2 + q * cout * 4
    # TODO(synk): for very large images, row-tile this path with manual halo DMA
    # (pl.ANY input + pltpu.make_async_copy) instead of one padded image per step.
    out = pl.pallas_call(
        functools.partial(_tap_kernel, taps=taps, act=act),
        out_shape=jax.ShapeDtypeStruct((n, q, cout), out_dtype),
        grid=(n,),
        in_specs=[
            pl.BlockSpec((1, l, cin), lambda i: (i, 0, 0)),
            pl.BlockSpec((t, cin, cout), lambda i: (0, 0, 0)),
            pl.BlockSpec((1, cout), lambda i: (0, 0)),
            pl.BlockSpec((1, cout), lambda i: (0, 0)),
        ],
        out_specs=pl.BlockSpec((1, q, cout), lambda i: (i, 0, 0)),
        compiler_params=pltpu.CompilerParams(
            dimension_semantics=("parallel",),
            vmem_limit_bytes=_vmem_limit(need)),
    )(xf, w_taps, scale, bias)
    return out.reshape(n, ho, wp, cout)[:, :, :wo, :]


def _conv_kxk_strided(xp_nhwc, w_taps, scale, bias, act, out_dtype, ho, wo, kh, kw, stride):
    """k>1, stride>1 conv: tap-stacked strided windows + row-tiled tap accumulation."""
    n, hp, wp, cin = xp_nhwc.shape
    t, _, cout = w_taps.shape
    m = n * ho * wo
    out_bytes = jnp.dtype(out_dtype).itemsize

    taps = []
    for ky in range(kh):
        for kx in range(kw):
            sl = jax.lax.slice(
                xp_nhwc,
                (0, ky, kx, 0),
                (n, ky + stride * (ho - 1) + 1, kx + stride * (wo - 1) + 1, cin),
                (1, stride, stride, 1))
            taps.append(sl.reshape(m, cin))
    xt = jnp.stack(taps, axis=0)         # (T, M, Cin) bf16

    def need(tile):
        return (2 * (t * tile * cin * 2 + tile * cout * out_bytes)
                + t * cin * cout * 2 + 4 * cout * 8 + tile * cout * 4)

    tm, nb = _pick_tm(m, need)
    mp = pl.cdiv(m, tm) * tm
    if mp != m:
        xt = jnp.pad(xt, ((0, 0), (0, mp - m), (0, 0)))

    out = pl.pallas_call(
        functools.partial(_taps_strided_kernel, act=act),
        out_shape=jax.ShapeDtypeStruct((mp, cout), out_dtype),
        grid=(mp // tm,),
        in_specs=[
            pl.BlockSpec((t, tm, cin), lambda i: (0, i, 0)),
            pl.BlockSpec((t, cin, cout), lambda i: (0, 0, 0)),
            pl.BlockSpec((1, cout), lambda i: (0, 0)),
            pl.BlockSpec((1, cout), lambda i: (0, 0)),
        ],
        out_specs=pl.BlockSpec((tm, cout), lambda i: (i, 0)),
        compiler_params=pltpu.CompilerParams(
            dimension_semantics=("parallel",),
            vmem_limit_bytes=_vmem_limit(nb)),
    )(xt, w_taps, scale, bias)
    return out[:m].reshape(n, ho, wo, cout)


def conv_forward(x_nchw, w_oihw, bn_scale, bn_bias, *, stride=1, padding=None,
                 act=True, out_dtype=jnp.float32):
    """YOLOP Conv.forward: Hardswish(BatchNorm2d(Conv2d(x, w, bias=False)))."""
    cout, cin, kh, kw = w_oihw.shape
    p = autopad(kh, padding)
    n, c, h, w_in = x_nchw.shape
    assert c == cin, (c, cin)            # TODO(synk): grouped conv (g>1) not lowered
    ho = (h + 2 * p - kh) // stride + 1
    wo = (w_in + 2 * p - kw) // stride + 1

    # channels-last, bf16 activations/weights (f32 accumulation in-kernel)
    x = jnp.transpose(x_nchw, (0, 2, 3, 1)).astype(jnp.bfloat16)
    w_taps = jnp.transpose(w_oihw, (2, 3, 1, 0)).reshape(kh * kw, cin, cout)
    w_taps = w_taps.astype(jnp.bfloat16)
    scale = bn_scale.reshape(1, cout).astype(jnp.float32)
    bias = bn_bias.reshape(1, cout).astype(jnp.float32)

    if kh == 1 and kw == 1:
        xp = jnp.pad(x, ((0, 0), (p, p), (p, p), (0, 0))) if p else x
        xs = xp[:, ::stride, ::stride, :][:, :ho, :wo, :] if stride > 1 else xp[:, :ho, :wo, :]
        y2d = _conv1x1(xs.reshape(n * ho * wo, cin), w_taps[0], scale, bias, act, out_dtype)
        y = y2d.reshape(n, ho, wo, cout)
    elif stride == 1:
        xp = jnp.pad(x, ((0, 0), (p, p), (p, p), (0, 0)))
        y = _conv_kxk_s1(xp, w_taps, scale, bias, act, out_dtype, ho, wo, kh, kw)
    else:
        xp = jnp.pad(x, ((0, 0), (p, p), (p, p), (0, 0)))
        y = _conv_kxk_strided(xp, w_taps, scale, bias, act, out_dtype, ho, wo, kh, kw, stride)

    return jnp.transpose(y, (0, 3, 1, 2))                 # back to NCHW


# ----------------------------------------------------------------------------
# Reference & param helpers
# ----------------------------------------------------------------------------
def make_bn(key, c, eps=1e-5):
    """Deterministic BatchNorm2d params folded to inference-mode (scale, bias)."""
    k1, k2, k3, k4 = jax.random.split(key, 4)
    gamma = 1.0 + 0.1 * jax.random.normal(k1, (c,))
    beta = 0.1 * jax.random.normal(k2, (c,))
    mean = 0.1 * jax.random.normal(k3, (c,))
    var = jax.random.uniform(k4, (c,), minval=0.5, maxval=1.5)
    scale = gamma / jnp.sqrt(var + eps)
    bias = beta - mean * scale
    return scale.astype(jnp.float32), bias.astype(jnp.float32)


def conv_reference(x_nchw, w_oihw, bn_scale, bn_bias, *, stride=1, padding=None, act=True):
    cout, _, kh, _ = w_oihw.shape
    p = autopad(kh, padding)
    x = x_nchw.astype(jnp.bfloat16).astype(jnp.float32)   # same quantization as kernel
    w = w_oihw.astype(jnp.bfloat16).astype(jnp.float32)
    y = jax.lax.conv_general_dilated(
        x, w, window_strides=(stride, stride), padding=((p, p), (p, p)),
        dimension_numbers=("NCHW", "OIHW", "NCHW"),
        precision=jax.lax.Precision.HIGHEST)
    y = y * bn_scale.reshape(1, cout, 1, 1) + bn_bias.reshape(1, cout, 1, 1)
    if act:
        y = y * jnp.clip(y + 3.0, 0.0, 6.0) / 6.0
    return y


# ----------------------------------------------------------------------------
# Demo / correctness check
# ----------------------------------------------------------------------------
if __name__ == "__main__":
    root = jax.random.PRNGKey(0)
    kw1, kb1, kw3, kb3, kw5, kb5, kx = jax.random.split(root, 7)

    N, c1, H, W = 2, 4, 16, 16
    c2 = 32
    x = jax.random.normal(kx, (N, c1, H, W), dtype=jnp.float32)

    # Conv(c1, c2, k=1) -- the module's default configuration (1x1 matmul path)
    w1 = (0.1 * jax.random.normal(kw1, (c2, c1, 1, 1))).astype(jnp.float32)
    s1, b1 = make_bn(kb1, c2)
    out1 = jax.block_until_ready(conv_forward(x, w1, s1, b1))
    ref1 = conv_reference(x, w1, s1, b1)
    assert out1.shape == (N, c2, H, W), out1.shape
    assert bool(jnp.allclose(out1, ref1, atol=1e-3, rtol=1e-3)), "1x1 mismatch vs reference"

    # Conv(c1, c2, k=3) -- 3x3 stride-1 path, tap accumulation with no HBM im2col
    w3 = (0.1 * jax.random.normal(kw3, (c2, c1, 3, 3))).astype(jnp.float32)
    s3, b3 = make_bn(kb3, c2)
    out3 = jax.block_until_ready(conv_forward(x, w3, s3, b3))
    ref3 = conv_reference(x, w3, s3, b3)
    assert out3.shape == (N, c2, H, W), out3.shape
    assert bool(jnp.allclose(out3, ref3, atol=1e-3, rtol=1e-3)), "3x3 mismatch vs reference"

    # Conv(c1, c2, k=3, s=2) -- YOLOP backbone downsampling config (strided tap path)
    w5 = (0.1 * jax.random.normal(kw5, (c2, c1, 3, 3))).astype(jnp.float32)
    s5, b5 = make_bn(kb5, c2)
    out5 = jax.block_until_ready(conv_forward(x, w5, s5, b5, stride=2))
    ref5 = conv_reference(x, w5, s5, b5, stride=2)
    assert out5.shape == (N, c2, H // 2, W // 2), out5.shape
    assert bool(jnp.allclose(out5, ref5, atol=1e-3, rtol=1e-3)), "3x3 s2 mismatch vs reference"

    print("KERNEL_OK")
</pallas_src>

<mosaic_0001>
module attributes {stable_mosaic.version = 11 : i64} {
  func.func @_pw_kernel(%arg0: i32, %arg1: memref<256x4xbf16, #tpu.memory_space<vmem>>, %arg2: memref<4x32xbf16, #tpu.memory_space<vmem>>, %arg3: memref<1x32xf32, #tpu.memory_space<vmem>>, %arg4: memref<1x32xf32, #tpu.memory_space<vmem>>, %arg5: memref<256x32xf32, #tpu.memory_space<vmem>>) attributes {dimension_semantics = [#tpu.dimension_semantics<parallel>], iteration_bounds = array<i64: 2>, scalar_prefetch = 0 : i64, scratch_operands = 0 : i64, tpu.core_type = #tpu.core_type<tc>, window_params = [{transform_indices = @transform_0, window_bounds = array<i64: 256, 4>}, {pipeline_mode = #tpu.pipeline_mode<synchronous>, transform_indices = @transform_1, window_bounds = array<i64: 4, 32>}, {pipeline_mode = #tpu.pipeline_mode<synchronous>, transform_indices = @transform_2, window_bounds = array<i64: 1, 32>}, {pipeline_mode = #tpu.pipeline_mode<synchronous>, transform_indices = @transform_3, window_bounds = array<i64: 1, 32>}, {transform_indices = @transform_4, window_bounds = array<i64: 256, 32>}]} {
    %c0 = arith.constant 0 : index
    %c0_0 = arith.constant 0 : index
    %0 = vector.load %arg1[%c0, %c0_0] : memref<256x4xbf16, #tpu.memory_space<vmem>>, vector<256x4xbf16>
    %c0_1 = arith.constant 0 : index
    %c0_2 = arith.constant 0 : index
    %1 = vector.load %arg2[%c0_1, %c0_2] : memref<4x32xbf16, #tpu.memory_space<vmem>>, vector<4x32xbf16>
    %cst = arith.constant dense<0.000000e+00> : vector<256x32xf32>
    %2 = tpu.matmul %0, %1, %cst {dimension_numbers = #tpu.dot_dimension_numbers<[1], [0], [0], [1], [0, 0, 1, 1], [], []>} : vector<256x4xbf16>, vector<4x32xbf16>, vector<256x32xf32> -> vector<256x32xf32>
    %c0_3 = arith.constant 0 : index
    %c0_4 = arith.constant 0 : index
    %3 = vector.load %arg3[%c0_3, %c0_4] : memref<1x32xf32, #tpu.memory_space<vmem>>, vector<1x32xf32>
    %4 = vector.broadcast %3 : vector<1x32xf32> to vector<256x32xf32>
    %5 = arith.mulf %2, %4 : vector<256x32xf32>
    %c0_5 = arith.constant 0 : index
    %c0_6 = arith.constant 0 : index
    %6 = vector.load %arg4[%c0_5, %c0_6] : memref<1x32xf32, #tpu.memory_space<vmem>>, vector<1x32xf32>
    %7 = vector.broadcast %6 : vector<1x32xf32> to vector<256x32xf32>
    %8 = arith.addf %5, %7 : vector<256x32xf32>
    %cst_7 = arith.constant 3.000000e+00 : f32
    %9 = vector.broadcast %cst_7 : f32 to vector<256x32xf32>
    %10 = arith.addf %8, %9 : vector<256x32xf32>
    %cst_8 = arith.constant 0.000000e+00 : f32
    %cst_9 = arith.constant 6.000000e+00 : f32
    %11 = vector.broadcast %cst_8 : f32 to vector<256x32xf32>
    %12 = arith.maximumf %11, %10 : vector<256x32xf32>
    %13 = vector.broadcast %cst_9 : f32 to vector<256x32xf32>
    %14 = arith.minimumf %13, %12 : vector<256x32xf32>
    %15 = arith.mulf %8, %14 : vector<256x32xf32>
    %cst_10 = arith.constant 0.166666672 : f32
    %16 = vector.broadcast %cst_10 : f32 to vector<256x32xf32>
    %17 = arith.mulf %15, %16 : vector<256x32xf32>
    %c0_11 = arith.constant 0 : index
    %c0_12 = arith.constant 0 : index
    %18 = vector.load %arg5[%c0_11, %c0_12] : memref<256x32xf32, #tpu.memory_space<vmem>>, vector<256x32xf32>
    tpu.vector_store %arg5[%c0_11, %c0_12], %17 {strides = array<i32>} : memref<256x32xf32, #tpu.memory_space<vmem>>, vector<256x32xf32>,
    return
  }
  func.func @transform_0(%arg0: i32) -> (i32, i32) {
    %c0_i32 = arith.constant 0 : i32
    %c0_i32_0 = arith.constant 0 : i32
    return %arg0, %c0_i32 : i32, i32
  }
  func.func @transform_1(%arg0: i32) -> (i32, i32) {
    %c0_i32 = arith.constant 0 : i32
    %c0_i32_0 = arith.constant 0 : i32
    %c0_i32_1 = arith.constant 0 : i32
    return %c0_i32, %c0_i32_0 : i32, i32
  }
  func.func @transform_2(%arg0: i32) -> (i32, i32) {
    %c0_i32 = arith.constant 0 : i32
    %c0_i32_0 = arith.constant 0 : i32
    %c0_i32_1 = arith.constant 0 : i32
    return %c0_i32, %c0_i32_0 : i32, i32
  }
  func.func @transform_3(%arg0: i32) -> (i32, i32) {
    %c0_i32 = arith.constant 0 : i32
    %c0_i32_0 = arith.constant 0 : i32
    %c0_i32_1 = arith.constant 0 : i32
    return %c0_i32, %c0_i32_0 : i32, i32
  }
  func.func @transform_4(%arg0: i32) -> (i32, i32) {
    %c0_i32 = arith.constant 0 : i32
    %c0_i32_0 = arith.constant 0 : i32
    return %arg0, %c0_i32 : i32, i32
  }
}

</mosaic_0001>

<bundles_post_ra>
// kernel: tpu_custom_call.1
= control target key start
LH: loop header
LB: loop body
LE: loop exit
PB: predicated region body
PF: predicated region fallthrough
CT: control target
= control target key end

     0   :  { %s1013_s15 = smov 0   ;;  %s1259_s0 = inlined_call_operand.vmem [shape: bf16[512,4], index: 0, kind: input, shape index: {}]   ;;  %s1260_s1 = inlined_call_operand.vmem [shape: bf16[4,32], index: 1, kind: input, shape index: {}]   ;;  %s1261_s2 = inlined_call_operand.vmem [shape: f32[1,32], index: 2, kind: input, shape index: {}]   ;;  %s1262_s3 = inlined_call_operand.vmem [shape: f32[1,32], index: 3, kind: input, shape index: {}]   ;;  %s1263_s4 = inlined_call_operand.vmem [shape: f32[512,32], index: 4, kind: output, shape index: {}]  }
   0x1 LB: > { %s856_s16 = sadd.s32 4294967295, %s986_s15   ;;  %p860_p0 = scmp.ge.s32.totalorder %s986_s15, 1  ;;  %s986_s15 = sphi %s1013_s15, %s14_s15  }
   0x2   : > { %p163_p1 = scmp.lt.s32.totalorder %s986_s15, 3 }
   0x4   : > { %p164_p2 = pnand %p860_p0, %p163_p1 }
   0x5   : > { %v234_v0 = vld [vmem:[%s1260_s1] sm:$0x3] (!%p164_p2)  ;;  %vm364_vm0 = vcmask (!%p164_p2), 1041408   ;;  %s861_s19 = sshll.u32 (!%p164_p2), %s856_s16, 5  ;;  %vm315_vm1 = vcmask (!%p164_p2), 31744   ;;  %vm767_vm2 = vcmask (!%p164_p2), 261120  }
   0x6   : > { %167 = sbr.rel (%p164_p2) target bundleno = 292 (0x124), region = 36  ;;  %954 = vmatprep.subr.msk.bf16.mxu0 (!%p164_p2), %vm364_vm0, %v234_v0  ;;  %955 = vmatprep.subr.msk.bf16.mxu1 (!%p164_p2), %vm364_vm0, %v234_v0  ;;  %v366_v1 = vsel (!%p164_p2), %vm364_vm0, %v234_v0, 0  ;;  %p190_p3 = scmp.lt.s32.totalorder (!%p164_p2), %s861_s19, 63  ;;  %v1067_v18 = vld [vmem:[%s1261_s2] ss:$0 sm:$0xff] (!%p164_p2) }
   0x7   : > { %919 = vmatpush3.bf16.msra.mxu0 (!%p164_p2), %v366_v1  ;;  %953 = vmatpush3.bf16.msra.mxu1 (!%p164_p2), %v366_v1  ;;  %v1072_v20 = vld [vmem:[%s1262_s3] ss:$0 sm:$0xff] (!%p164_p2) }
   0xd   : > { %s1265_s19 = smov (!%p190_p3, %s861_s19), 63 }
   0xe   : > { %s862_s20 = sshll.u32 %s1265_s19, 2  ;;  %s864_s28 = sshll.u32 %s1265_s19, 3 }
   0xf   : > { %s1030_s23 = scalar_lea.vmem %s1259_s0, %s862_s20  ;;  %s1094_s5 = scalar_lea.vmem %s1263_s4, %s864_s28 }
  0x10   : > { %v964_v2 = vld [vmem:[%s1030_s23] sm:$0xff]   ;;  %v966_v4 = vld [vmem:[%s1030_s23 + $0x8] sm:$0xff]   ;;  %v968_v6 = vld [vmem:[%s1030_s23 + $0x10] sm:$0xff]  }
  0x11   : > { %v965_v3 = vld [vmem:[%s1030_s23 + $0x40] sm:$0xff]   ;;  %920 = vmatprep.mubr.msk.bf16.mxu0 %vm315_vm1, %v964_v2  ;;  %v967_v5 = vld [vmem:[%s1030_s23 + $0x48] sm:$0xff]   ;;  %v969_v7 = vld [vmem:[%s1030_s23 + $0x50] sm:$0xff]  }
  0x12   : > { %936 = vmatprep.mubr.msk.bf16.mxu1 %vm315_vm1, %v965_v3  ;;  %921 = vmatmul.mubr.msk.bf16.vlgmr.msra.gmra.mrb[0].mxu0 %vm315_vm1, %v966_v4  ;;  %v970_v8 = vld [vmem:[%s1030_s23 + $0x18] sm:$0xff]   ;;  %v972_v10 = vld [vmem:[%s1030_s23 + $0x20] sm:$0xff]   ;;  %v974_v12 = vld [vmem:[%s1030_s23 + $0x28] sm:$0xff]  }
  0x13   : > { %937 = vmatmul.mubr.msk.bf16.vlgmr.msra.gmra.mrb[0].mxu1 %vm315_vm1, %v967_v5  ;;  %924 = vmatprep.mubr.msk.bf16.mxu0 %vm315_vm1, %v968_v6  ;;  %v971_v9 = vld [vmem:[%s1030_s23 + $0x58] sm:$0xff]   ;;  %v973_v11 = vld [vmem:[%s1030_s23 + $0x60] sm:$0xff]   ;;  %v975_v13 = vld [vmem:[%s1030_s23 + $0x68] sm:$0xff]  }
  0x14   : > { %940 = vmatprep.mubr.msk.bf16.mxu1 %vm315_vm1, %v969_v7  ;;  %v976_v14 = vld [vmem:[%s1030_s23 + $0x30] sm:$0xff]   ;;  %v978_v16 = vld [vmem:[%s1030_s23 + $0x38] sm:$0xff]  }
  0x15   : > { %v977_v15 = vld [vmem:[%s1030_s23 + $0x70] sm:$0xff]   ;;  %v979_v17 = vld [vmem:[%s1030_s23 + $0x78] sm:$0xff]  }
  0x1a   : > { %925 = vmatmul.mubr.msk.bf16.gmra.mrb[4].mxu0 %vm315_vm1, %v970_v8 }
  0x1b   : > { %941 = vmatmul.mubr.msk.bf16.gmra.mrb[4].mxu1 %vm315_vm1, %v971_v9  ;;  %928 = vmatprep.mubr.msk.bf16.mxu0 %vm315_vm1, %v972_v10 }
  0x1c   : > { %944 = vmatprep.mubr.msk.bf16.mxu1 %vm315_vm1, %v973_v11 }
  0x22   : > { %929 = vmatmul.mubr.msk.bf16.gmra.mrb[8].mxu0 %vm315_vm1, %v974_v12 }
  0x23   : > { %945 = vmatmul.mubr.msk.bf16.gmra.mrb[8].mxu1 %vm315_vm1, %v975_v13  ;;  %932 = vmatprep.mubr.msk.bf16.mxu0 %vm315_vm1, %v976_v14 }
  0x24   : > { %948 = vmatprep.mubr.msk.bf16.mxu1 %vm315_vm1, %v977_v15 }
  0x2a   : > { %933 = vmatmul.mubr.msk.bf16.gmra.mrb[12].mxu0 %vm315_vm1, %v978_v16 }
  0x2b   : > { %949 = vmatmul.mubr.msk.bf16.gmra.mrb[12].mxu1 %vm315_vm1, %v979_v17 }
  0xe5   : > { %v922_v19 = vpop.f32.mrb[0].mxu0 }
  0xe6   : > { %v538_v21 = vmul.f32 %v922_v19, %v1067_v18  ;;  %v938_v22 = vpop.f32.mrb[0].mxu1  ;;  %v402_v23 = vpop.f32.mrb[1].mxu0 }
  0xe7   : > { %v554_v24 = vmul.f32 %v938_v22, %v1067_v18  ;;  %v536_v25 = vmul.f32 %v1067_v18, %v402_v23  ;;  %v466_v26 = vpop.f32.mrb[1].mxu1  ;;  %v923_v27 = vpop.f32.mrb[2].mxu0 }
  0xe8   : > { %v577_v28 = vadd.f32 %v1072_v20, %v538_v21  ;;  %v552_v29 = vmul.f32 %v1067_v18, %v466_v26  ;;  %v539_v30 = vmul.f32 %v923_v27, %v1067_v18  ;;  %v939_v31 = vpop.f32.mrb[2].mxu1  ;;  %v405_v32 = vpop.f32.mrb[3].mxu0 }
  0xe9   : > { %v593_v33 = vadd.f32 %v1072_v20, %v554_v24  ;;  %v575_v34 = vadd.f32 %v1072_v20, %v536_v25  ;;  %v555_v35 = vmul.f32 %v939_v31, %v1067_v18  ;;  %v537_v36 = vmul.f32 %v1067_v18, %v405_v32  ;;  %v469_v37 = vpop.f32.mrb[3].mxu1 }
  0xea   : > { %v609_v38 = vadd.f32 3.0, %v577_v28  ;;  %v591_v39 = vadd.f32 %v1072_v20, %v552_v29  ;;  %v578_v40 = vadd.f32 %v1072_v20, %v539_v30  ;;  %v553_v41 = vmul.f32 %v1067_v18, %v469_v37 }
  0xeb   : > { %v625_v42 = vadd.f32 3.0, %v593_v33  ;;  %v607_v43 = vadd.f32 3.0, %v575_v34  ;;  %v594_v44 = vadd.f32 %v1072_v20, %v555_v35  ;;  %v576_v45 = vadd.f32 %v1072_v20, %v537_v36 }
  0xec   : > { %v641_v46 = vmax.f32 %v609_v38, 0.0  ;;  %v623_v47 = vadd.f32 3.0, %v591_v39  ;;  %v610_v48 = vadd.f32 3.0, %v578_v40  ;;  %v592_v49 = vadd.f32 %v1072_v20, %v553_v41 }
  0xed   : > { %v657_v50 = vmax.f32 %v625_v42, 0.0  ;;  %v639_v51 = vmax.f32 %v607_v43, 0.0  ;;  %v626_v52 = vadd.f32 3.0, %v594_v44  ;;  %v608_v53 = vadd.f32 3.0, %v576_v45  ;;  %v926_v54 = vpop.f32.mrb[4].mxu0 }
  0xee   : > { %v673_v55 = vmin.f32 %v641_v46, 6.0  ;;  %v655_v56 = vmax.f32 %v623_v47, 0.0  ;;  %v642_v57 = vmax.f32 %v610_v48, 0.0  ;;  %v624_v58 = vadd.f32 3.0, %v592_v49  ;;  %v942_v59 = vpop.f32.mrb[4].mxu1  ;;  %v418_v60 = vpop.f32.mrb[5].mxu0 }
  0xef   : > { %v689_v61 = vmin.f32 %v657_v50, 6.0  ;;  %v671_v62 = vmin.f32 %v639_v51, 6.0  ;;  %v658_v63 = vmax.f32 %v626_v52, 0.0  ;;  %v640_v0 = vmax.f32 %v608_v53, 0.0  ;;  %v482_v1 = vpop.f32.mrb[5].mxu1  ;;  %v927_v2 = vpop.f32.mrb[6].mxu0 }
  0xf0   : > { %v705_v3 = vmul.f32 %v673_v55, %v577_v28  ;;  %v687_v4 = vmin.f32 %v655_v56, 6.0  ;;  %v674_v5 = vmin.f32 %v642_v57, 6.0  ;;  %v656_v6 = vmax.f32 %v624_v58, 0.0  ;;  %v943_v7 = vpop.f32.mrb[6].mxu1  ;;  %v421_v8 = vpop.f32.mrb[7].mxu0 }
  0xf1   : > { %v721_v9 = vmul.f32 %v689_v61, %v593_v33  ;;  %v703_v10 = vmul.f32 %v671_v62, %v575_v34  ;;  %v690_v11 = vmin.f32 %v658_v63, 6.0  ;;  %v672_v12 = vmin.f32 %v640_v0, 6.0  ;;  %v485_v13 = vpop.f32.mrb[7].mxu1 }
  0xf2   : > { %v737_v14 = vmul.f32 0.16666667, %v705_v3  ;;  %v719_v15 = vmul.f32 %v687_v4, %v591_v39  ;;  %v706_v16 = vmul.f32 %v674_v5, %v578_v40  ;;  %v688_v17 = vmin.f32 %v656_v6, 6.0 }
  0xf3   : > { %v753_v19 = vmul.f32 0.16666667, %v721_v9  ;;  %v735_v21 = vmul.f32 0.16666667, %v703_v10  ;;  %v722_v22 = vmul.f32 %v690_v11, %v594_v44  ;;  %v704_v23 = vmul.f32 %v672_v12, %v576_v45 }
  0xf4   : > { %770 = vst.msk [vmem:[%s1094_s5 + $0x10] sm:$0xff] %vm767_vm2, %v737_v14  ;;  %v751_v24 = vmul.f32 0.16666667, %v719_v15  ;;  %v738_v25 = vmul.f32 0.16666667, %v706_v16  ;;  %v720_v26 = vmul.f32 %v688_v17, %v592_v49  ;;  %v542_v27 = vmul.f32 %v926_v54, %v1067_v18 }
  0xf5   : > { %786 = vst.msk [vmem:[%s1094_s5 + $0x90] sm:$0xff] %vm767_vm2, %v753_v19  ;;  %768 = vst.msk [vmem:[%s1094_s5] sm:$0xff] %vm767_vm2, %v735_v21  ;;  %v754_v28 = vmul.f32 0.16666667, %v722_v22  ;;  %v736_v29 = vmul.f32 0.16666667, %v704_v23  ;;  %v558_v30 = vmul.f32 %v942_v59, %v1067_v18  ;;  %v540_v31 = vmul.f32 %v1067_v18, %v418_v60 }
  0xf6   : > { %v1105_v32 = vpop.f32.mrb[8].mxu0  ;;  %784 = vst.msk [vmem:[%s1094_s5 + $0x80] sm:$0xff] %vm767_vm2, %v751_v24  ;;  %771 = vst.msk [vmem:[%s1094_s5 + $0x18] sm:$0xff] %vm767_vm2, %v738_v25  ;;  %v752_v33 = vmul.f32 0.16666667, %v720_v26  ;;  %v581_v34 = vadd.f32 %v1072_v20, %v542_v27  ;;  %v556_v35 = vmul.f32 %v1067_v18, %v482_v1  ;;  %v543_v36 = vmul.f32 %v927_v2, %v1067_v18  ;;  %v1114_v37 = vpop.f32.mrb[8].mxu1 }
  0xf7   : > { %v1116_v38 = vpop.f32.mrb[9].mxu0  ;;  %787 = vst.msk [vmem:[%s1094_s5 + $0x98] sm:$0xff] %vm767_vm2, %v754_v28  ;;  %769 = vst.msk [vmem:[%s1094_s5 + $0x8] sm:$0xff] %vm767_vm2, %v736_v29  ;;  %v597_v39 = vadd.f32 %v1072_v20, %v558_v30  ;;  %v579_v40 = vadd.f32 %v1072_v20, %v540_v31  ;;  %v559_v41 = vmul.f32 %v943_v7, %v1067_v18  ;;  %v1126_v43 = vpop.f32.mrb[9].mxu1 }
  0xf8   : > { %v541_v42 = vmul.f32 %v1067_v18, %v421_v8  ;;  %v1128_v44 = vpop.f32.mrb[10].mxu0  ;;  %785 = vst.msk [vmem:[%s1094_s5 + $0x88] sm:$0xff] %vm767_vm2, %v752_v33  ;;  %v613_v45 = vadd.f32 3.0, %v581_v34  ;;  %v595_v46 = vadd.f32 %v1072_v20, %v556_v35  ;;  %v582_v47 = vadd.f32 %v1072_v20, %v543_v36  ;;  %v1135_v49 = vpop.f32.mrb[10].mxu1 }
  0xf9   : > { %v557_v48 = vmul.f32 %v1067_v18, %v485_v13  ;;  %v1137_v50 = vpop.f32.mrb[11].mxu0  ;;  %v629_v51 = vadd.f32 3.0, %v597_v39  ;;  %v611_v52 = vadd.f32 3.0, %v579_v40  ;;  %v598_v53 = vadd.f32 %v1072_v20, %v559_v41  ;;  %v1141_v55 = vpop.f32.mrb[11].mxu1 }
  0xfa   : > { %v580_v54 = vadd.f32 %v1072_v20, %v541_v42  ;;  %v645_v56 = vmax.f32 %v613_v45, 0.0  ;;  %v627_v57 = vadd.f32 3.0, %v595_v46  ;;  %v614_v58 = vadd.f32 3.0, %v582_v47 }
  0xfb   : > { %v596_v59 = vadd.f32 %v1072_v20, %v557_v48  ;;  %v661_v60 = vmax.f32 %v629_v51, 0.0  ;;  %v643_v61 = vmax.f32 %v611_v52, 0.0  ;;  %v630_v62 = vadd.f32 3.0, %v598_v53 }
  0xfc   : > { %v612_v63 = vadd.f32 3.0, %v580_v54  ;;  %v677_v0 = vmin.f32 %v645_v56, 6.0  ;;  %v659_v1 = vmax.f32 %v627_v57, 0.0  ;;  %v646_v2 = vmax.f32 %v614_v58, 0.0 }
  0xfd   : > { %v628_v3 = vadd.f32 3.0, %v596_v59  ;;  %v693_v4 = vmin.f32 %v661_v60, 6.0  ;;  %v675_v5 = vmin.f32 %v643_v61, 6.0  ;;  %v662_v6 = vmax.f32 %v630_v62, 0.0  ;;  %v1144_v8 = vpop.f32.mrb[12].mxu0 }
  0xfe   : > { %v644_v7 = vmax.f32 %v612_v63, 0.0  ;;  %v709_v9 = vmul.f32 %v677_v0, %v581_v34  ;;  %v691_v10 = vmin.f32 %v659_v1, 6.0  ;;  %v678_v11 = vmin.f32 %v646_v2, 6.0  ;;  %v1146_v13 = vpop.f32.mrb[12].mxu1  ;;  %v1148_v14 = vpop.f32.mrb[13].mxu0 }
  0xff   : > { %v660_v12 = vmax.f32 %v628_v3, 0.0  ;;  %v725_v15 = vmul.f32 %v693_v4, %v597_v39  ;;  %v707_v16 = vmul.f32 %v675_v5, %v579_v40  ;;  %v694_v17 = vmin.f32 %v662_v6, 6.0  ;;  %v1150_v21 = vpop.f32.mrb[13].mxu1  ;;  %v1152_v22 = vpop.f32.mrb[14].mxu0 }
 0x100   : > { %v676_v19 = vmin.f32 %v644_v7, 6.0  ;;  %v741_v23 = vmul.f32 0.16666667, %v709_v9  ;;  %v723_v24 = vmul.f32 %v691_v10, %v595_v46  ;;  %v710_v25 = vmul.f32 %v678_v11, %v582_v47  ;;  %v1154_v27 = vpop.f32.mrb[14].mxu1  ;;  %v1156_v28 = vpop.f32.mrb[15].mxu0 }
 0x101   : > { %v692_v26 = vmin.f32 %v660_v12, 6.0  ;;  %v757_v29 = vmul.f32 0.16666667, %v725_v15  ;;  %v739_v30 = vmul.f32 0.16666667, %v707_v16  ;;  %v726_v31 = vmul.f32 %v694_v17, %v598_v53  ;;  %v1158_v34 = vpop.f32.mrb[15].mxu1 }
 0x102   : > { %v708_v33 = vmul.f32 %v676_v19, %v580_v54  ;;  %774 = vst.msk [vmem:[%s1094_s5 + $0x30] sm:$0xff] %vm767_vm2, %v741_v23  ;;  %v755_v35 = vmul.f32 0.16666667, %v723_v24  ;;  %v742_v36 = vmul.f32 0.16666667, %v710_v25  ;;  %v546_v40 = vmul.f32 %v1105_v32, %v1067_v18 }
 0x103   : > { %v724_v39 = vmul.f32 %v692_v26, %v596_v59  ;;  %790 = vst.msk [vmem:[%s1094_s5 + $0xb0] sm:$0xff] %vm767_vm2, %v757_v29  ;;  %772 = vst.msk [vmem:[%s1094_s5 + $0x20] sm:$0xff] %vm767_vm2, %v739_v30  ;;  %v758_v41 = vmul.f32 0.16666667, %v726_v31  ;;  %v562_v45 = vmul.f32 %v1114_v37, %v1067_v18  ;;  %v544_v46 = vmul.f32 %v1067_v18, %v1116_v38 }
 0x104   : > { %v740_v42 = vmul.f32 0.16666667, %v708_v33  ;;  %788 = vst.msk [vmem:[%s1094_s5 + $0xa0] sm:$0xff] %vm767_vm2, %v755_v35  ;;  %775 = vst.msk [vmem:[%s1094_s5 + $0x38] sm:$0xff] %vm767_vm2, %v742_v36  ;;  %v585_v32 = vadd.f32 %v1072_v20, %v546_v40  ;;  %v560_v48 = vmul.f32 %v1067_v18, %v1126_v43  ;;  %v547_v51 = vmul.f32 %v1128_v44, %v1067_v18 }
 0x105   : > { %v756_v47 = vmul.f32 0.16666667, %v724_v39  ;;  %791 = vst.msk [vmem:[%s1094_s5 + $0xb8] sm:$0xff] %vm767_vm2, %v758_v41  ;;  %v601_v37 = vadd.f32 %v1072_v20, %v562_v45  ;;  %v583_v38 = vadd.f32 %v1072_v20, %v544_v46  ;;  %v563_v52 = vmul.f32 %v1135_v49, %v1067_v18 }
 0x106   : > { %773 = vst.msk [vmem:[%s1094_s5 + $0x28] sm:$0xff] %vm767_vm2, %v740_v42  ;;  %v545_v53 = vmul.f32 %v1067_v18, %v1137_v50  ;;  %v617_v43 = vadd.f32 3.0, %v585_v32  ;;  %v599_v54 = vadd.f32 %v1072_v20, %v560_v48  ;;  %v586_v44 = vadd.f32 %v1072_v20, %v547_v51 }
 0x107   : > { %789 = vst.msk [vmem:[%s1094_s5 + $0xa8] sm:$0xff] %vm767_vm2, %v756_v47  ;;  %v561_v56 = vmul.f32 %v1067_v18, %v1141_v55  ;;  %v633_v57 = vadd.f32 3.0, %v601_v37  ;;  %v615_v58 = vadd.f32 3.0, %v583_v38  ;;  %v602_v59 = vadd.f32 %v1072_v20, %v563_v52 }
 0x108   : > { %v584_v60 = vadd.f32 %v1072_v20, %v545_v53  ;;  %v649_v49 = vmax.f32 %v617_v43, 0.0  ;;  %v631_v61 = vadd.f32 3.0, %v599_v54  ;;  %v618_v62 = vadd.f32 3.0, %v586_v44 }
 0x109   : > { %v600_v50 = vadd.f32 %v1072_v20, %v561_v56  ;;  %v665_v63 = vmax.f32 %v633_v57, 0.0  ;;  %v647_v0 = vmax.f32 %v615_v58, 0.0  ;;  %v634_v1 = vadd.f32 3.0, %v602_v59 }
 0x10a   : > { %v616_v2 = vadd.f32 3.0, %v584_v60  ;;  %v681_v3 = vmin.f32 %v649_v49, 6.0  ;;  %v663_v4 = vmax.f32 %v631_v61, 0.0  ;;  %v650_v5 = vmax.f32 %v618_v62, 0.0 }
 0x10b   : > { %v632_v6 = vadd.f32 3.0, %v600_v50  ;;  %v697_v55 = vmin.f32 %v665_v63, 6.0  ;;  %v679_v7 = vmin.f32 %v647_v0, 6.0  ;;  %v666_v9 = vmax.f32 %v634_v1, 0.0 }
 0x10c   : > { %v648_v10 = vmax.f32 %v616_v2, 0.0  ;;  %v713_v11 = vmul.f32 %v681_v3, %v585_v32  ;;  %v695_v12 = vmin.f32 %v663_v4, 6.0  ;;  %v682_v15 = vmin.f32 %v650_v5, 6.0 }
 0x10d   : > { %v664_v16 = vmax.f32 %v632_v6, 0.0  ;;  %v729_v17 = vmul.f32 %v697_v55, %v601_v37  ;;  %v711_v19 = vmul.f32 %v679_v7, %v583_v38  ;;  %v698_v23 = vmin.f32 %v666_v9, 6.0 }
 0x10e   : > { %v680_v24 = vmin.f32 %v648_v10, 6.0  ;;  %v745_v25 = vmul.f32 0.16666667, %v713_v11  ;;  %v727_v26 = vmul.f32 %v695_v12, %v599_v54  ;;  %v714_v29 = vmul.f32 %v682_v15, %v586_v44 }
 0x10f   : > { %v696_v30 = vmin.f32 %v664_v16, 6.0  ;;  %v761_v31 = vmul.f32 0.16666667, %v729_v17  ;;  %v743_v33 = vmul.f32 0.16666667, %v711_v19  ;;  %v730_v35 = vmul.f32 %v698_v23, %v602_v59 }
 0x110   : > { %v712_v36 = vmul.f32 %v680_v24, %v584_v60  ;;  %778 = vst.msk [vmem:[%s1094_s5 + $0x50] sm:$0xff] %vm767_vm2, %v745_v25  ;;  %v759_v39 = vmul.f32 0.16666667, %v727_v26  ;;  %v746_v40 = vmul.f32 0.16666667, %v714_v29  ;;  %v550_v42 = vmul.f32 %v1144_v8, %v1067_v18 }
 0x111   : > { %v728_v41 = vmul.f32 %v696_v30, %v600_v50  ;;  %794 = vst.msk [vmem:[%s1094_s5 + $0xd0] sm:$0xff] %vm767_vm2, %v761_v31  ;;  %776 = vst.msk [vmem:[%s1094_s5 + $0x40] sm:$0xff] %vm767_vm2, %v743_v33  ;;  %v762_v45 = vmul.f32 0.16666667, %v730_v35  ;;  %v566_v47 = vmul.f32 %v1146_v13, %v1067_v18  ;;  %v548_v32 = vmul.f32 %v1067_v18, %v1148_v14 }
 0x112   : > { %v744_v46 = vmul.f32 0.16666667, %v712_v36  ;;  %792 = vst.msk [vmem:[%s1094_s5 + $0xc0] sm:$0xff] %vm767_vm2, %v759_v39  ;;  %779 = vst.msk [vmem:[%s1094_s5 + $0x58] sm:$0xff] %vm767_vm2, %v746_v40  ;;  %v589_v8 = vadd.f32 %v1072_v20, %v550_v42  ;;  %v564_v51 = vmul.f32 %v1067_v18, %v1150_v21  ;;  %v551_v37 = vmul.f32 %v1152_v22, %v1067_v18 }
 0x113   : > { %v760_v48 = vmul.f32 0.16666667, %v728_v41  ;;  %795 = vst.msk [vmem:[%s1094_s5 + $0xd8] sm:$0xff] %vm767_vm2, %v762_v45  ;;  %v605_v13 = vadd.f32 %v1072_v20, %v566_v47  ;;  %v587_v14 = vadd.f32 %v1072_v20, %v548_v32  ;;  %v567_v38 = vmul.f32 %v1154_v27, %v1067_v18 }
 0x114   : > { %777 = vst.msk [vmem:[%s1094_s5 + $0x48] sm:$0xff] %vm767_vm2, %v744_v46  ;;  %v549_v52 = vmul.f32 %v1067_v18, %v1156_v28  ;;  %v621_v21 = vadd.f32 3.0, %v589_v8  ;;  %v603_v53 = vadd.f32 %v1072_v20, %v564_v51  ;;  %v590_v22 = vadd.f32 %v1072_v20, %v551_v37 }
 0x115   : > { %793 = vst.msk [vmem:[%s1094_s5 + $0xc8] sm:$0xff] %vm767_vm2, %v760_v48  ;;  %v565_v43 = vmul.f32 %v1067_v18, %v1158_v34  ;;  %v637_v54 = vadd.f32 3.0, %v605_v13  ;;  %v619_v44 = vadd.f32 3.0, %v587_v14  ;;  %v606_v56 = vadd.f32 %v1072_v20, %v567_v38 }
 0x116   : > { %v588_v57 = vadd.f32 %v1072_v20, %v549_v52  ;;  %v653_v27 = vmax.f32 %v621_v21, 0.0  ;;  %v635_v58 = vadd.f32 3.0, %v603_v53  ;;  %v622_v59 = vadd.f32 3.0, %v590_v22 }
 0x117   : > { %v604_v28 = vadd.f32 %v1072_v20, %v565_v43  ;;  %v669_v60 = vmax.f32 %v637_v54, 0.0  ;;  %v651_v49 = vmax.f32 %v619_v44, 0.0  ;;  %v638_v61 = vadd.f32 3.0, %v606_v56 }
 0x118   : > { %v620_v62 = vadd.f32 3.0, %v588_v57  ;;  %v685_v50 = vmin.f32 %v653_v27, 6.0  ;;  %v667_v63 = vmax.f32 %v635_v58, 0.0  ;;  %v654_v0 = vmax.f32 %v622_v59, 0.0 }
 0x119   : > { %v636_v1 = vadd.f32 3.0, %v604_v28  ;;  %v701_v18 = vmin.f32 %v669_v60, 6.0  ;;  %v683_v34 = vmin.f32 %v651_v49, 6.0  ;;  %v670_v2 = vmax.f32 %v638_v61, 0.0 }
 0x11a   : > { %v652_v3 = vmax.f32 %v620_v62, 0.0  ;;  %v717_v4 = vmul.f32 %v685_v50, %v589_v8  ;;  %v699_v5 = vmin.f32 %v667_v63, 6.0  ;;  %v686_v6 = vmin.f32 %v654_v0, 6.0 }
 0x11b   : > { %v668_v55 = vmax.f32 %v636_v1, 0.0  ;;  %v733_v7 = vmul.f32 %v701_v18, %v605_v13  ;;  %v715_v20 = vmul.f32 %v683_v34, %v587_v14  ;;  %v702_v9 = vmin.f32 %v670_v2, 6.0 }
 0x11c   : > { %v684_v10 = vmin.f32 %v652_v3, 6.0  ;;  %v749_v11 = vmul.f32 0.16666667, %v717_v4  ;;  %v731_v12 = vmul.f32 %v699_v5, %v603_v53  ;;  %v718_v15 = vmul.f32 %v686_v6, %v590_v22 }
 0x11d   : > { %v700_v16 = vmin.f32 %v668_v55, 6.0  ;;  %v765_v17 = vmul.f32 0.16666667, %v733_v7  ;;  %v747_v19 = vmul.f32 0.16666667, %v715_v20  ;;  %v734_v23 = vmul.f32 %v702_v9, %v606_v56 }
 0x11e   : > { %v716_v24 = vmul.f32 %v684_v10, %v588_v57  ;;  %782 = vst.msk [vmem:[%s1094_s5 + $0x70] sm:$0xff] %vm767_vm2, %v749_v11  ;;  %v763_v25 = vmul.f32 0.16666667, %v731_v12  ;;  %v750_v26 = vmul.f32 0.16666667, %v718_v15 }
 0x11f   : > { %v732_v29 = vmul.f32 %v700_v16, %v604_v28  ;;  %798 = vst.msk [vmem:[%s1094_s5 + $0xf0] sm:$0xff] %vm767_vm2, %v765_v17  ;;  %780 = vst.msk [vmem:[%s1094_s5 + $0x60] sm:$0xff] %vm767_vm2, %v747_v19  ;;  %v766_v30 = vmul.f32 0.16666667, %v734_v23 }
 0x120   : > { %v748_v31 = vmul.f32 0.16666667, %v716_v24  ;;  %796 = vst.msk [vmem:[%s1094_s5 + $0xe0] sm:$0xff] %vm767_vm2, %v763_v25  ;;  %783 = vst.msk [vmem:[%s1094_s5 + $0x78] sm:$0xff] %vm767_vm2, %v750_v26 }
 0x121   : > { %v764_v33 = vmul.f32 0.16666667, %v732_v29  ;;  %799 = vst.msk [vmem:[%s1094_s5 + $0xf8] sm:$0xff] %vm767_vm2, %v766_v30 }
 0x122   : > { %781 = vst.msk [vmem:[%s1094_s5 + $0x68] sm:$0xff] %vm767_vm2, %v748_v31 }
 0x123   : > { %797 = vst.msk [vmem:[%s1094_s5 + $0xe8] sm:$0xff] %vm767_vm2, %v764_v33 }
 0x124 PF: > { %s14_s15 = sadd.s32 1, %s986_s15  }
 0x125   : > { %p11_p4 = scmp.ge.s32.totalorder %s14_s15, 4  }
 0x127   :  { %13 = sbr.rel (!%p11_p4) target bundleno = 1 (0x1), region = 66 }

</bundles_post_ra>
